<compile_context>
chip_gen: v6e
topology: v6e:2x2x1
jax: 0.10.0
libtpu: 0.0.40
codegen_flags: <defaults>
</compile_context>

<pallas_src>
import functools

import jax
import jax.numpy as jnp
from jax.experimental import pallas as pl
from jax.experimental.pallas import tpu as pltpu

_LANE = 128
_SUBLANE = 8
_MAX_TOKEN_TILE = 1024
_DEFAULT_MXU_DTYPE = jnp.bfloat16       # MXU operand dtype when storage is f32
_HAS_BUFFERED = hasattr(pl, "Buffered")
_RESIDENT_SINGLE_BUFFER = _HAS_BUFFERED  # flipped off once if lowering rejects
_VMEM_BUDGETS = None


def _round_up(x, m):
    return ((x + m - 1) // m) * m


def _cdiv(a, b):
    return (a + b - 1) // b


def _vmem_budgets():
    """(tile budget, scoped vmem limit), generation-aware."""
    global _VMEM_BUDGETS
    if _VMEM_BUDGETS is None:
        cap = None
        try:
            cap = getattr(pltpu.get_tpu_info(), "vmem_capacity_bytes", None)
        except Exception:
            cap = None
        if not cap:
            cap = 64 * 1024 * 1024  # conservative default: v7x per-TC VMEM
        # ~50% of physical for streamed tiles + resident weights, ~75% scoped
        # limit: 64/96 MiB on v5e/v6e (128 MiB), 32/48 MiB on v7x (64 MiB).
        _VMEM_BUDGETS = (int(min(cap // 2, 64 * 1024 * 1024)),
                         int(min(cap * 3 // 4, 100 * 1024 * 1024)))
    return _VMEM_BUDGETS


def _row_align(dtype):
    """Token-tile row alignment: 8 rows for f32, 16 for bf16, 32 for 1-byte
    (sub-32-bit dtypes pack rows per sublane -> unmasked packed vst)."""
    itemsize = jnp.dtype(dtype).itemsize
    return _SUBLANE * max(1, 4 // max(itemsize, 1))


def _pick_token_tile(num_rows, per_row_bytes, fixed_bytes, row_align,
                     tile_budget):
    """Largest row tile (multiple of row_align, <= 1024) inside the budget."""
    avail = max(tile_budget - fixed_bytes, row_align * per_row_bytes)
    tile = (avail // max(per_row_bytes, 1)) // row_align * row_align
    tile = int(min(tile, _MAX_TOKEN_TILE))
    if num_rows > 2 * _LANE:
        # >= 2 grid steps per v7x TensorCore (>= 4 total) so the x-tile DMA
        # and output writeback overlap compute inside each core (per-step
        # overhead is only ~0.35 us, so the extra steps are cheap).
        tile = min(tile, _round_up(_cdiv(num_rows, 4), row_align))
    tile = min(tile, _round_up(max(num_rows, 1), row_align))
    return max(tile, row_align)


def _resolve_compute_dtype(compute_dtype, *storage_dtypes):
    if compute_dtype is not None:
        return jnp.dtype(compute_dtype)
    storage = jnp.dtype(storage_dtypes[0])
    for d in storage_dtypes[1:]:
        storage = jnp.promote_types(storage, d)
    if storage == jnp.dtype(jnp.float32):
        # bf16 MXU operands + f32 accumulation by default (2-4x MXU rate on
        # v5e/v6e/v7x); pass compute_dtype=jnp.float32 to opt out.
        return jnp.dtype(_DEFAULT_MXU_DTYPE)
    return jnp.dtype(storage)


def _resident_spec(block_shape, index_map, single_buffer):
    """BlockSpec for a grid-resident operand (constant index_map).

    Buffered(1) drops the default double-buffering (it never re-DMAs anyway),
    halving its VMEM footprint."""
    if single_buffer:
        try:
            return pl.BlockSpec(block_shape, index_map,
                                pipeline_mode=pl.Buffered(1))
        except TypeError:  # very old jax without pipeline_mode
            pass
    return pl.BlockSpec(block_shape, index_map)


def _run_with_resident_fallback(build_and_run):
    """Run with single-buffered resident weights; fall back once if the local
    jax build rejects Buffered(1) at lowering time (eager path)."""
    global _RESIDENT_SINGLE_BUFFER
    if _RESIDENT_SINGLE_BUFFER:
        try:
            return build_and_run(True)
        except Exception:
            _RESIDENT_SINGLE_BUFFER = False
    return build_and_run(False)


# ----------------------------------------------------------------------------
# Kernels
# ----------------------------------------------------------------------------
def _mlp_kernel(x_ref, w1_ref, b1_ref, w2_ref, b2_ref, o_ref, *, compute_dtype):
    """out = relu(x @ W1 + b1) @ W2 + b2.  Weights arrive pre-cast to the MXU
    operand dtype; accumulation is f32; bias + ReLU run in f32 on the VPU."""
    x = x_ref[...].astype(compute_dtype)
    h = jnp.dot(x, w1_ref[...], preferred_element_type=jnp.float32)
    h = jnp.maximum(h + b1_ref[...], 0.0)
    y = jnp.dot(h.astype(compute_dtype), w2_ref[...],
                preferred_element_type=jnp.float32) + b2_ref[...]
    o_ref[...] = y.astype(o_ref.dtype)


def _mlp_combined_kernel(vis_ref, tproj_ref, w1v_ref, w2_ref, b2_ref, o_ref, *,
                         compute_dtype):
    """out = relu(visual @ W1_visual + tproj) @ W2 + b2.

    `tproj` = text[:, 0, :] @ W1_text + b1, computed once per batch element on
    the host side and broadcast over that batch element's visual positions.
    Replaces the torch reference's repeat + concat materialization."""
    x = vis_ref[...].astype(compute_dtype)                        # (tl, Dv)
    h = jnp.dot(x, w1v_ref[...], preferred_element_type=jnp.float32)
    h = jnp.maximum(h + tproj_ref[...], 0.0)                      # (tl, Hp)
    y = jnp.dot(h.astype(compute_dtype), w2_ref[...],
                preferred_element_type=jnp.float32) + b2_ref[...]
    o_ref[...] = y.astype(o_ref.dtype)


# ----------------------------------------------------------------------------
# Pallas-call wrappers
# ----------------------------------------------------------------------------
def fused_mlp(x2d, w1, b1, w2, b2, *, compute_dtype=None):
    """[M, Din] -> [M, Op] = relu(x @ W1 + b1) @ W2 + b2 (single Pallas call)."""
    M, Din = x2d.shape
    Hp = w1.shape[1]
    Op = w2.shape[1]
    compute_dtype = _resolve_compute_dtype(compute_dtype, x2d.dtype, w1.dtype)

    # One-time casts outside the kernel: weights to MXU operand dtype (halves
    # resident VMEM in bf16), biases to f32 (added in f32 on the VPU).
    w1c = w1.astype(compute_dtype)
    w2c = w2.astype(compute_dtype)
    b1f = b1.astype(jnp.float32).reshape(1, Hp)
    b2f = b2.astype(jnp.float32).reshape(1, Op)

    xb = jnp.dtype(x2d.dtype).itemsize
    cb = jnp.dtype(compute_dtype).itemsize
    tile_budget, vmem_limit = _vmem_budgets()
    wbuf = 1 if _RESIDENT_SINGLE_BUFFER else 2
    per_row = 2 * Din * xb + 2 * Op * xb + (Hp + Op) * 4 + (Din + Hp) * cb
    fixed = wbuf * ((Din * Hp + Hp * Op) * cb + (Hp + Op) * 4) + (1 << 20)
    tm = _pick_token_tile(M, per_row, fixed, _row_align(x2d.dtype), tile_budget)

    flops = 2 * M * (Din * Hp + Hp * Op)
    bytes_accessed = (M * (Din + Op) * xb
                      + (Din * Hp + Hp * Op) * cb + (Hp + Op) * 4)
    kernel = functools.partial(_mlp_kernel, compute_dtype=compute_dtype)

    def build_and_run(single_buffer):
        return pl.pallas_call(
            kernel,
            out_shape=jax.ShapeDtypeStruct((M, Op), x2d.dtype),
            grid_spec=pltpu.PrefetchScalarGridSpec(
                num_scalar_prefetch=0,
                grid=(_cdiv(M, tm),),
                in_specs=[
                    pl.BlockSpec((tm, Din), lambda i: (i, 0)),   # streamed x
                    _resident_spec((Din, Hp), lambda i: (0, 0), single_buffer),
                    _resident_spec((1, Hp), lambda i: (0, 0), single_buffer),
                    _resident_spec((Hp, Op), lambda i: (0, 0), single_buffer),
                    _resident_spec((1, Op), lambda i: (0, 0), single_buffer),
                ],
                out_specs=pl.BlockSpec((tm, Op), lambda i: (i, 0)),
            ),
            compiler_params=pltpu.CompilerParams(
                dimension_semantics=("parallel",),
                vmem_limit_bytes=vmem_limit),
            cost_estimate=pl.CostEstimate(
                flops=flops, transcendentals=0,
                bytes_accessed=bytes_accessed),
        )(x2d, w1c, b1f, w2c, b2f)

    return _run_with_resident_fallback(build_and_run)


def fused_mlp_combined(visual, tproj, w1v, w2, b2, *, compute_dtype=None):
    """visual [B, Lv, Dv] + per-batch text projection (b1 folded in)
    tproj [B, 1, Hp] -> [B, Lv, Op]."""
    B, Lv, Dv = visual.shape
    Hp = w1v.shape[1]
    Op = w2.shape[1]
    compute_dtype = _resolve_compute_dtype(compute_dtype, visual.dtype,
                                           w1v.dtype)

    w1c = w1v.astype(compute_dtype)
    w2c = w2.astype(compute_dtype)
    b2f = b2.astype(jnp.float32).reshape(1, Op)
    tproj = tproj.astype(jnp.float32)

    xb = jnp.dtype(visual.dtype).itemsize
    cb = jnp.dtype(compute_dtype).itemsize
    tile_budget, vmem_limit = _vmem_budgets()
    wbuf = 1 if _RESIDENT_SINGLE_BUFFER else 2
    per_row = 2 * Dv * xb + 2 * Op * xb + (Hp + Op) * 4 + (Dv + Hp) * cb
    fixed = (wbuf * ((Dv * Hp + Hp * Op) * cb + Op * 4)
             + 2 * Hp * 4 + (1 << 20))
    tl = _pick_token_tile(Lv, per_row, fixed, _row_align(visual.dtype),
                          tile_budget)

    flops = 2 * B * Lv * (Dv * Hp + Hp * Op)
    bytes_accessed = (B * Lv * (Dv + Op) * xb
                      + (Dv * Hp + Hp * Op) * cb + B * Hp * 4 + Op * 4)
    kernel = functools.partial(_mlp_combined_kernel,
                               compute_dtype=compute_dtype)

    def build_and_run(single_buffer):
        return pl.pallas_call(
            kernel,
            out_shape=jax.ShapeDtypeStruct((B, Lv, Op), visual.dtype),
            grid_spec=pltpu.PrefetchScalarGridSpec(
                num_scalar_prefetch=0,
                grid=(B, _cdiv(Lv, tl)),
                in_specs=[
                    pl.BlockSpec((None, tl, Dv), lambda b, i: (b, i, 0)),
                    pl.BlockSpec((None, 1, Hp), lambda b, i: (b, 0, 0)),
                    _resident_spec((Dv, Hp), lambda b, i: (0, 0),
                                   single_buffer),
                    _resident_spec((Hp, Op), lambda b, i: (0, 0),
                                   single_buffer),
                    _resident_spec((1, Op), lambda b, i: (0, 0),
                                   single_buffer),
                ],
                out_specs=pl.BlockSpec((None, tl, Op), lambda b, i: (b, i, 0)),
            ),
            compiler_params=pltpu.CompilerParams(
                dimension_semantics=("parallel", "parallel"),
                vmem_limit_bytes=vmem_limit),
            cost_estimate=pl.CostEstimate(
                flops=flops, transcendentals=0,
                bytes_accessed=bytes_accessed),
        )(visual, tproj, w1c, w2c, b2f)

    return _run_with_resident_fallback(build_and_run)


def _slice_out(y, out_dim):
    # No-op when the model's output_dim is already a multiple of 128.
    return y[..., :out_dim] if y.shape[-1] != out_dim else y


def _apply_mlp(x, w1, b1, w2, b2, out_dim, compute_dtype):
    lead = x.shape[:-1]
    x2d = x.reshape(-1, x.shape[-1])
    y2d = fused_mlp(x2d, w1, b1, w2, b2, compute_dtype=compute_dtype)
    y2d = _slice_out(y2d, out_dim)
    return y2d.reshape(*lead, out_dim)


# ----------------------------------------------------------------------------
# Parameter init (nn.Linear-style uniform init; weights stored [in, out];
# hidden/output feature dims zero-padded to multiples of 128 for lane density)
# ----------------------------------------------------------------------------
def init_mlp_projector_params(key, input_dim, hidden_dim, output_dim,
                              dtype=jnp.float32, combined_visual_dim=None):
    hp = _round_up(hidden_dim, _LANE)
    op = _round_up(output_dim, _LANE)

    def linear(key, fan_in, fan_out, fan_out_pad, fan_in_pad=None):
        kw, kb = jax.random.split(key)
        bound = 1.0 / (fan_in ** 0.5)
        w = jax.random.uniform(kw, (fan_in, fan_out), jnp.float32, -bound, bound)
        b = jax.random.uniform(kb, (fan_out,), jnp.float32, -bound, bound)
        w = jnp.pad(w, ((0, 0), (0, fan_out_pad - fan_out))).astype(dtype)
        b = jnp.pad(b, ((0, fan_out_pad - fan_out),)).astype(dtype)
        if fan_in_pad is not None and fan_in_pad != fan_in:
            w = jnp.pad(w, ((0, fan_in_pad - fan_in), (0, 0)))
        return w, b

    k1, k2, k3, k4 = jax.random.split(key, 4)
    vw1, vb1 = linear(k1, input_dim, hidden_dim, hp)
    vw2, vb2 = linear(k2, hidden_dim, output_dim, op, fan_in_pad=hp)
    cw1, cb1 = linear(k3, input_dim * 2, hidden_dim, hp)
    cw2, cb2 = linear(k4, hidden_dim, output_dim, op, fan_in_pad=hp)

    params = {
        "input_dim": input_dim,
        "hidden_dim": hidden_dim,
        "output_dim": output_dim,
        "mlp_visual": (vw1, vb1, vw2, vb2),
        "mlp_combined": (cw1, cb1, cw2, cb2),
        "combined_split": None,
    }
    if combined_visual_dim is not None:
        # Pre-split mlp_combined's W1 once at init so the case-3 path never
        # slices/relayouts the weight at a (possibly non-8-aligned) row offset
        # per forward call.
        dv = int(combined_visual_dim)
        params["combined_split"] = {
            "visual_dim": dv,
            "w1_visual": cw1[:dv],
            "w1_text": cw1[dv:],
        }
    return params


# ----------------------------------------------------------------------------
# Forward dispatch (mirrors MLPProjector.forward)
# ----------------------------------------------------------------------------
def mlp_projector_forward(params, visual_features, text_features=None, *,
                          compute_dtype=None):
    """compute_dtype=None (default): bf16 MXU operands + f32 accumulation.
    Pass compute_dtype=jnp.float32 for strict f32 MXU numerics."""
    mlp_visual = params["mlp_visual"]
    mlp_combined = params["mlp_combined"]
    combined_in = 2 * params["input_dim"]
    out_dim = params["output_dim"]

    if text_features is None:
        # 3-D and non-3-D inputs take the same path in the torch module.
        return _apply_mlp(visual_features, *mlp_visual, out_dim, compute_dtype)

    # TODO(synk): the torch RuntimeError try/except fallback branch has no
    # Pallas/JAX equivalent (shape errors are static under tracing).
    if visual_features.ndim == 3 and text_features.ndim == 3:
        batch_size, visual_seq_len, visual_dim = visual_features.shape
        _, _text_seq_len, text_dim = text_features.shape
        if visual_dim != text_dim and visual_dim + text_dim == combined_in:
            cw1, cb1, cw2, cb2 = mlp_combined
            split = params.get("combined_split")
            if split is not None and split["visual_dim"] == visual_dim:
                w1_visual, w1_text = split["w1_visual"], split["w1_text"]
            else:
                # TODO(synk): per-call slice at a non-8-aligned row offset
                # relayouts W1 in HBM outside the kernel; pass
                # combined_visual_dim at init to pre-split it once.
                w1_visual = cw1[:visual_dim]
                w1_text = cw1[visual_dim:]
            # torch's expanded_text[:, 0, :] is text token 0 of each batch
            # element repeated over every visual position.  Project it once
            # per batch element (tiny [B,Dt]@[Dt,Hp] glue matmul), fold b1 in,
            # and broadcast it inside the kernel.
            text_first = text_features[:, 0, :].astype(jnp.float32)
            tproj = jnp.dot(text_first, w1_text.astype(jnp.float32),
                            preferred_element_type=jnp.float32)
            tproj = (tproj + cb1.astype(jnp.float32)).reshape(batch_size, 1, -1)
            y = fused_mlp_combined(visual_features, tproj, w1_visual, cw2, cb2,
                                   compute_dtype=compute_dtype)
            return _slice_out(y, out_dim)
        else:
            return _apply_mlp(visual_features, *mlp_visual, out_dim,
                              compute_dtype)
    else:
        combined = jnp.concatenate([visual_features, text_features], axis=-1)
        return _apply_mlp(combined, *mlp_combined, out_dim, compute_dtype)


# ----------------------------------------------------------------------------
# Pure-JAX reference (uses the padded params; padding contributes exact zeros)
# ----------------------------------------------------------------------------
def _ref_mlp(x, w1, b1, w2, b2):
    return jnp.maximum(x @ w1 + b1, 0.0) @ w2 + b2


if __name__ == "__main__":
    key = jax.random.PRNGKey(0)
    input_dim, hidden_dim, output_dim = 32, 64, 32
    B, Lv, Lt = 2, 8, 6
    f32 = jnp.float32

    kp, kv, kt, kv2, kt2, kvc, ktc = jax.random.split(key, 7)
    params = init_mlp_projector_params(kp, input_dim, hidden_dim, output_dim)

    # Case 1: text_features is None -> mlp_visual (strict f32 MXU path)
    visual = jax.random.normal(kv, (B, Lv, input_dim), f32)
    out1 = mlp_projector_forward(params, visual, None, compute_dtype=f32)
    jax.block_until_ready(out1)
    ref1 = _ref_mlp(visual, *params["mlp_visual"])[..., :output_dim]
    assert out1.shape == (B, Lv, output_dim)
    assert jnp.allclose(out1, ref1, atol=1e-4, rtol=1e-4)

    # Case 1b: same inputs, default bf16 MXU operands (f32 accumulation)
    out1b = mlp_projector_forward(params, visual, None)
    jax.block_until_ready(out1b)
    assert jnp.allclose(out1b, ref1, atol=5e-2, rtol=5e-2)

    # Case 2: both 3-D, same feature dim -> falls through to mlp_visual
    text_same = jax.random.normal(kt, (B, Lt, input_dim), f32)
    out2 = mlp_projector_forward(params, visual, text_same, compute_dtype=f32)
    jax.block_until_ready(out2)
    assert jnp.allclose(out2, ref1, atol=1e-4, rtol=1e-4)

    # Case 3: dims differ, sum to 2*input_dim -> mlp_combined (pre-split W1)
    vdim, tdim = 40, 24
    params_split = init_mlp_projector_params(
        kp, input_dim, hidden_dim, output_dim, combined_visual_dim=vdim)
    visual_c = jax.random.normal(kvc, (B, Lv, vdim), f32)
    text_c = jax.random.normal(ktc, (B, Lt, tdim), f32)
    out3 = mlp_projector_forward(params_split, visual_c, text_c,
                                 compute_dtype=f32)
    jax.block_until_ready(out3)
    comb_ref = jnp.concatenate(
        [visual_c.reshape(B * Lv, vdim),
         jnp.repeat(text_c[:, 0, :], Lv, axis=0)], axis=-1)
    ref3 = _ref_mlp(comb_ref, *params_split["mlp_combined"])[:, :output_dim]
    ref3 = ref3.reshape(B, Lv, -1)
    assert out3.shape == (B, Lv, output_dim)
    assert jnp.allclose(out3, ref3, atol=1e-4, rtol=1e-4)

    # Case 3b: same call without the pre-split (per-call W1 slice fallback)
    out3b = mlp_projector_forward(params, visual_c, text_c, compute_dtype=f32)
    jax.block_until_ready(out3b)
    assert jnp.allclose(out3b, ref3, atol=1e-4, rtol=1e-4)

    # Case 4: non-3-D inputs -> concat last dim, mlp_combined
    visual_2d = jax.random.normal(kv2, (B, input_dim), f32)
    text_2d = jax.random.normal(kt2, (B, input_dim), f32)
    out4 = mlp_projector_forward(params, visual_2d, text_2d, compute_dtype=f32)
    jax.block_until_ready(out4)
    ref4 = _ref_mlp(jnp.concatenate([visual_2d, text_2d], axis=-1),
                    *params["mlp_combined"])[:, :output_dim]
    assert out4.shape == (B, output_dim)
    assert jnp.allclose(out4, ref4, atol=1e-4, rtol=1e-4)

    # Case 5: bf16 storage + bf16 MXU operands (f32 accumulation).  The hidden
    # activation is intentionally rounded to bf16 before the second matmul,
    # hence the loose tolerance.
    params_bf16 = init_mlp_projector_params(kp, input_dim, hidden_dim,
                                            output_dim, dtype=jnp.bfloat16)
    visual_bf16 = visual.astype(jnp.bfloat16)
    out5 = mlp_projector_forward(params_bf16, visual_bf16, None)
    jax.block_until_ready(out5)
    pv32 = [p.astype(f32) for p in params_bf16["mlp_visual"]]
    ref5 = _ref_mlp(visual_bf16.astype(f32), *pv32)[..., :output_dim]
    assert out5.shape == (B, Lv, output_dim)
    assert out5.dtype == jnp.bfloat16
    assert jnp.allclose(out5.astype(f32), ref5, atol=1e-1, rtol=1e-1)

    print("KERNEL_OK")
</pallas_src>

<mosaic_0001>
module attributes {stable_mosaic.version = 11 : i64} {
  func.func @_mlp_kernel(%arg0: i32, %arg1: memref<16x32xf32, #tpu.memory_space<vmem>>, %arg2: memref<32x128xf32, #tpu.memory_space<vmem>>, %arg3: memref<1x128xf32, #tpu.memory_space<vmem>>, %arg4: memref<128x128xf32, #tpu.memory_space<vmem>>, %arg5: memref<1x128xf32, #tpu.memory_space<vmem>>, %arg6: memref<16x128xf32, #tpu.memory_space<vmem>>) attributes {dimension_semantics = [#tpu.dimension_semantics<parallel>], iteration_bounds = array<i64: 1>, scalar_prefetch = 0 : i64, scratch_operands = 0 : i64, tpu.core_type = #tpu.core_type<tc>, window_params = [{transform_indices = @transform_0, window_bounds = array<i64: 16, 32>}, {pipeline_mode = #tpu.pipeline_mode<synchronous>, transform_indices = @transform_1, window_bounds = array<i64: 32, 128>}, {pipeline_mode = #tpu.pipeline_mode<synchronous>, transform_indices = @transform_2, window_bounds = array<i64: 1, 128>}, {pipeline_mode = #tpu.pipeline_mode<synchronous>, transform_indices = @transform_3, window_bounds = array<i64: 128, 128>}, {pipeline_mode = #tpu.pipeline_mode<synchronous>, transform_indices = @transform_4, window_bounds = array<i64: 1, 128>}, {transform_indices = @transform_5, window_bounds = array<i64: 16, 128>}]} {
    %c0 = arith.constant 0 : index
    %c0_0 = arith.constant 0 : index
    %0 = vector.load %arg1[%c0, %c0_0] : memref<16x32xf32, #tpu.memory_space<vmem>>, vector<16x32xf32>
    %c0_1 = arith.constant 0 : index
    %c0_2 = arith.constant 0 : index
    %1 = vector.load %arg2[%c0_1, %c0_2] : memref<32x128xf32, #tpu.memory_space<vmem>>, vector<32x128xf32>
    %cst = arith.constant dense<0.000000e+00> : vector<16x128xf32>
    %2 = tpu.matmul %0, %1, %cst {dimension_numbers = #tpu.dot_dimension_numbers<[1], [0], [0], [1], [0, 0, 1, 1], [], []>} : vector<16x32xf32>, vector<32x128xf32>, vector<16x128xf32> -> vector<16x128xf32>
    %c0_3 = arith.constant 0 : index
    %c0_4 = arith.constant 0 : index
    %3 = vector.load %arg3[%c0_3, %c0_4] : memref<1x128xf32, #tpu.memory_space<vmem>>, vector<1x128xf32>
    %4 = vector.broadcast %3 : vector<1x128xf32> to vector<16x128xf32>
    %5 = arith.addf %2, %4 : vector<16x128xf32>
    %cst_5 = arith.constant 0.000000e+00 : f32
    %6 = vector.broadcast %cst_5 : f32 to vector<16x128xf32>
    %7 = arith.maximumf %5, %6 : vector<16x128xf32>
    %c0_6 = arith.constant 0 : index
    %c0_7 = arith.constant 0 : index
    %8 = vector.load %arg4[%c0_6, %c0_7] : memref<128x128xf32, #tpu.memory_space<vmem>>, vector<128x128xf32>
    %cst_8 = arith.constant dense<0.000000e+00> : vector<16x128xf32>
    %9 = tpu.matmul %7, %8, %cst_8 {dimension_numbers = #tpu.dot_dimension_numbers<[1], [0], [0], [1], [0, 0, 1, 1], [], []>} : vector<16x128xf32>, vector<128x128xf32>, vector<16x128xf32> -> vector<16x128xf32>
    %c0_9 = arith.constant 0 : index
    %c0_10 = arith.constant 0 : index
    %10 = vector.load %arg5[%c0_9, %c0_10] : memref<1x128xf32, #tpu.memory_space<vmem>>, vector<1x128xf32>
    %11 = vector.broadcast %10 : vector<1x128xf32> to vector<16x128xf32>
    %12 = arith.addf %9, %11 : vector<16x128xf32>
    %c0_11 = arith.constant 0 : index
    %c0_12 = arith.constant 0 : index
    %13 = vector.load %arg6[%c0_11, %c0_12] : memref<16x128xf32, #tpu.memory_space<vmem>>, vector<16x128xf32>
    tpu.vector_store %arg6[%c0_11, %c0_12], %12 {strides = array<i32>} : memref<16x128xf32, #tpu.memory_space<vmem>>, vector<16x128xf32>,
    return
  }
  func.func @transform_0(%arg0: i32) -> (i32, i32) {
    %c0_i32 = arith.constant 0 : i32
    %c0_i32_0 = arith.constant 0 : i32
    return %arg0, %c0_i32 : i32, i32
  }
  func.func @transform_1(%arg0: i32) -> (i32, i32) {
    %c0_i32 = arith.constant 0 : i32
    %c0_i32_0 = arith.constant 0 : i32
    %c0_i32_1 = arith.constant 0 : i32
    return %c0_i32, %c0_i32_0 : i32, i32
  }
  func.func @transform_2(%arg0: i32) -> (i32, i32) {
    %c0_i32 = arith.constant 0 : i32
    %c0_i32_0 = arith.constant 0 : i32
    %c0_i32_1 = arith.constant 0 : i32
    return %c0_i32, %c0_i32_0 : i32, i32
  }
  func.func @transform_3(%arg0: i32) -> (i32, i32) {
    %c0_i32 = arith.constant 0 : i32
    %c0_i32_0 = arith.constant 0 : i32
    %c0_i32_1 = arith.constant 0 : i32
    return %c0_i32, %c0_i32_0 : i32, i32
  }
  func.func @transform_4(%arg0: i32) -> (i32, i32) {
    %c0_i32 = arith.constant 0 : i32
    %c0_i32_0 = arith.constant 0 : i32
    %c0_i32_1 = arith.constant 0 : i32
    return %c0_i32, %c0_i32_0 : i32, i32
  }
  func.func @transform_5(%arg0: i32) -> (i32, i32) {
    %c0_i32 = arith.constant 0 : i32
    %c0_i32_0 = arith.constant 0 : i32
    return %arg0, %c0_i32 : i32, i32
  }
}

module attributes {stable_mosaic.version = 11 : i64} {
  func.func @_mlp_kernel(%arg0: i32, %arg1: memref<16x32xf32, #tpu.memory_space<vmem>>, %arg2: memref<32x128xf32, #tpu.memory_space<vmem>>, %arg3: memref<1x128xf32, #tpu.memory_space<vmem>>, %arg4: memref<128x128xf32, #tpu.memory_space<vmem>>, %arg5: memref<1x128xf32, #tpu.memory_space<vmem>>, %arg6: memref<16x128xf32, #tpu.memory_space<vmem>>) attributes {dimension_semantics = [#tpu.dimension_semantics<parallel>], iteration_bounds = array<i64: 1>, scalar_prefetch = 0 : i64, scratch_operands = 0 : i64, tpu.core_type = #tpu.core_type<tc>, window_params = [{transform_indices = @transform_0, window_bounds = array<i64: 16, 32>}, {pipeline_mode = #tpu.pipeline_mode<synchronous>, transform_indices = @transform_1, window_bounds = array<i64: 32, 128>}, {pipeline_mode = #tpu.pipeline_mode<synchronous>, transform_indices = @transform_2, window_bounds = array<i64: 1, 128>}, {pipeline_mode = #tpu.pipeline_mode<synchronous>, transform_indices = @transform_3, window_bounds = array<i64: 128, 128>}, {pipeline_mode = #tpu.pipeline_mode<synchronous>, transform_indices = @transform_4, window_bounds = array<i64: 1, 128>}, {transform_indices = @transform_5, window_bounds = array<i64: 16, 128>}]} {
    %c0 = arith.constant 0 : index
    %c0_0 = arith.constant 0 : index
    %0 = vector.load %arg1[%c0, %c0_0] : memref<16x32xf32, #tpu.memory_space<vmem>>, vector<16x32xf32>
    %c0_1 = arith.constant 0 : index
    %c0_2 = arith.constant 0 : index
    %1 = vector.load %arg2[%c0_1, %c0_2] : memref<32x128xf32, #tpu.memory_space<vmem>>, vector<32x128xf32>
    %cst = arith.constant dense<0.000000e+00> : vector<16x128xf32>
    %2 = tpu.matmul %0, %1, %cst {dimension_numbers = #tpu.dot_dimension_numbers<[1], [0], [0], [1], [0, 0, 1, 1], [], []>} : vector<16x32xf32>, vector<32x128xf32>, vector<16x128xf32> -> vector<16x128xf32>
    %c0_3 = arith.constant 0 : index
    %c0_4 = arith.constant 0 : index
    %3 = vector.load %arg3[%c0_3, %c0_4] : memref<1x128xf32, #tpu.memory_space<vmem>>, vector<1x128xf32>
    %4 = vector.broadcast %3 : vector<1x128xf32> to vector<16x128xf32>
    %5 = arith.addf %2, %4 : vector<16x128xf32>
    %cst_5 = arith.constant 0.000000e+00 : f32
    %6 = vector.broadcast %cst_5 : f32 to vector<16x128xf32>
    %7 = arith.maximumf %5, %6 : vector<16x128xf32>
    %c0_6 = arith.constant 0 : index
    %c0_7 = arith.constant 0 : index
    %8 = vector.load %arg4[%c0_6, %c0_7] : memref<128x128xf32, #tpu.memory_space<vmem>>, vector<128x128xf32>
    %cst_8 = arith.constant dense<0.000000e+00> : vector<16x128xf32>
    %9 = tpu.matmul %7, %8, %cst_8 {dimension_numbers = #tpu.dot_dimension_numbers<[1], [0], [0], [1], [0, 0, 1, 1], [], []>} : vector<16x128xf32>, vector<128x128xf32>, vector<16x128xf32> -> vector<16x128xf32>
    %c0_9 = arith.constant 0 : index
    %c0_10 = arith.constant 0 : index
    %10 = vector.load %arg5[%c0_9, %c0_10] : memref<1x128xf32, #tpu.memory_space<vmem>>, vector<1x128xf32>
    %11 = vector.broadcast %10 : vector<1x128xf32> to vector<16x128xf32>
    %12 = arith.addf %9, %11 : vector<16x128xf32>
    %c0_11 = arith.constant 0 : index
    %c0_12 = arith.constant 0 : index
    %13 = vector.load %arg6[%c0_11, %c0_12] : memref<16x128xf32, #tpu.memory_space<vmem>>, vector<16x128xf32>
    tpu.vector_store %arg6[%c0_11, %c0_12], %12 {strides = array<i32>} : memref<16x128xf32, #tpu.memory_space<vmem>>, vector<16x128xf32>,
    return
  }
  func.func @transform_0(%arg0: i32) -> (i32, i32) {
    %c0_i32 = arith.constant 0 : i32
    %c0_i32_0 = arith.constant 0 : i32
    return %arg0, %c0_i32 : i32, i32
  }
  func.func @transform_1(%arg0: i32) -> (i32, i32) {
    %c0_i32 = arith.constant 0 : i32
    %c0_i32_0 = arith.constant 0 : i32
    %c0_i32_1 = arith.constant 0 : i32
    return %c0_i32, %c0_i32_0 : i32, i32
  }
  func.func @transform_2(%arg0: i32) -> (i32, i32) {
    %c0_i32 = arith.constant 0 : i32
    %c0_i32_0 = arith.constant 0 : i32
    %c0_i32_1 = arith.constant 0 : i32
    return %c0_i32, %c0_i32_0 : i32, i32
  }
  func.func @transform_3(%arg0: i32) -> (i32, i32) {
    %c0_i32 = arith.constant 0 : i32
    %c0_i32_0 = arith.constant 0 : i32
    %c0_i32_1 = arith.constant 0 : i32
    return %c0_i32, %c0_i32_0 : i32, i32
  }
  func.func @transform_4(%arg0: i32) -> (i32, i32) {
    %c0_i32 = arith.constant 0 : i32
    %c0_i32_0 = arith.constant 0 : i32
    %c0_i32_1 = arith.constant 0 : i32
    return %c0_i32, %c0_i32_0 : i32, i32
  }
  func.func @transform_5(%arg0: i32) -> (i32, i32) {
    %c0_i32 = arith.constant 0 : i32
    %c0_i32_0 = arith.constant 0 : i32
    return %arg0, %c0_i32 : i32, i32
  }
}

</mosaic_0001>

<bundles_post_ra>
// kernel: tpu_custom_call.1
= control target key start
LH: loop header
LB: loop body
LE: loop exit
PB: predicated region body
PF: predicated region fallthrough
CT: control target
= control target key end

     0   :  { %10 = vsyncpa [#allocation3], 0  ;;  %s511_s0 = inlined_call_operand.hbm [shape: f32[16,32], index: 0, kind: input, shape index: {}]   ;;  %s512_s1 = inlined_call_operand.hbm [shape: f32[32,128], index: 1, kind: input, shape index: {}]   ;;  %s513_s2 = inlined_call_operand.vmem [shape: f32[1,128], index: 2, kind: input, shape index: {}]   ;;  %s514_s3 = inlined_call_operand.hbm [shape: f32[128,128], index: 3, kind: input, shape index: {}]   ;;  %s515_s4 = inlined_call_operand.vmem [shape: f32[1,128], index: 4, kind: input, shape index: {}]   ;;  %s516_s5 = inlined_call_operand.hbm [shape: f32[16,128], index: 5, kind: output, shape index: {}]  }
   0x1   :  { %11 = vsyncpa [#allocation6], 0 }
   0x2   :  { %12 = vsyncpa [#allocation4], 0  ;;  %s443_s18 = smov [#allocation5]   ;;  %s444_s20 = smov [#allocation2]  }
   0x3   :  { %s30_s19 = sshll.u32 %s443_s18, 4  ;;  %s18_s21 = sshll.u32 %s444_s20, 4  ;;  %s31_s19 = int_to_ptr.vmem [resolvable:$true] %s30_s19  ;;  %s19_s21 = int_to_ptr.vmem [resolvable:$true] %s18_s21 }
   0x4   :  { %s365_s22 = scalar_lea.vmem %s31_s19, 512  ;;  %p370_p1 = scmp.lt.s32.totalorder %s31_s19, %s31_s19 }
   0x5   :  { %p366_p0 = scmp.ne.s32.totalorder %s31_s19, %s365_s22  ;;  %p371_p2 = scmp.lt.s32.totalorder %s365_s22, %s365_s22 }
   0x7   :  { %p372_p3 = por %p371_p2, %p370_p1 }
   0x9   :  { %p373_p4 = pnand %p372_p3, %p366_p0 }
   0xb   :  { %376 = shalt.err (!%p373_p4)
}
   0xc   :  { %s445_s23 = smov 128   ;;  %s446_s24 = smov 8  }
   0xd   :  { %36 = dma.hbm_to_vmem [thread:$0]  %s512_s1, 512, %s31_s19, [#allocation6], %s445_s23, %s445_s23, %s446_s24  }
   0xe   :  { %s385_s27 = scalar_lea.vmem %s19_s21, 256  ;;  %p390_p6 = scmp.lt.s32.totalorder %s19_s21, %s19_s21 }
   0xf   :  { %p386_p5 = scmp.ne.s32.totalorder %s19_s21, %s385_s27  ;;  %p391_p7 = scmp.lt.s32.totalorder %s385_s27, %s385_s27 }
  0x11   :  { %p392_p8 = por %p391_p7, %p390_p6 }
  0x13   :  { %p393_p9 = pnand %p392_p8, %p386_p5 }
  0x15   :  { %396 = shalt.err (!%p393_p9)
}
  0x16   :  { %24 = dma.hbm_to_vmem [thread:$0]  %s511_s0, 256, %s19_s21, [#allocation3], %s445_s23, %s445_s23, %s446_s24  }
  0x17   :  { %s447_s30 = smov [#allocation7]  }
  0x18   :  { %s44_s6 = sshll.u32 %s447_s30, 4  ;;  %s45_s6 = int_to_ptr.vmem [resolvable:$true] %s44_s6 }
  0x19   :  { %s405_s7 = scalar_lea.vmem %s45_s6, 2048  ;;  %p410_p11 = scmp.lt.s32.totalorder %s45_s6, %s45_s6 }
  0x1a   :  { %p406_p10 = scmp.ne.s32.totalorder %s45_s6, %s405_s7  ;;  %p411_p12 = scmp.lt.s32.totalorder %s405_s7, %s405_s7 }
  0x1c   :  { %p412_p13 = por %p411_p12, %p410_p11 }
  0x1e   :  { %p413_p0 = pnand %p412_p13, %p406_p10 }
  0x20   :  { %416 = shalt.err (!%p413_p0)
}
  0x21   :  { %50 = dma.hbm_to_vmem [thread:$0]  %s514_s3, 2048, %s45_s6, [#allocation6], %s445_s23, %s445_s23, %s446_s24  }
  0x22   :  { %437 = dma.done.wait [#allocation3], 256  }
  0x23   :  { %438 = vsyncadd [#allocation3], 4294967040 }
  0x24   :  { %439 = dma.done.wait [#allocation6], 2560  }
  0x25   :  { %440 = vsyncadd [#allocation6], 4294964736  ;;  %vm75_vm0 = vcmask 261120   ;;  %v67_v0 = vld [vmem:[#allocation5 + $0x18] sm:$0xff]  ;;  %v66_v1 = vld [vmem:[#allocation5 + $0x10] sm:$0xff]  ;;  %s448_s11 = smov [#allocation8]  }
  0x26   :  { %305 = vmatprep.subr.mxu0 %v67_v0  ;;  %v62_v2 = vld [vmem:[#allocation2] sm:$0xff]  ;;  %v65_v3 = vld [vmem:[#allocation5 + $0x8] sm:$0xff]  ;;  %v174_v4 = vld [vmem:[#allocation7 + $0x78] sm:$0xff]  ;;  %s264_s12 = sshll.u32 %s448_s11, 4  ;;  %s265_s12 = int_to_ptr.vmem [resolvable:$true] %s264_s12 }
  0x27   :  { %306 = vmatpush3.msra.mxu0 %v67_v0  ;;  %313 = vmatprep.mubr.msk.f32.mxu0 %vm75_vm0, %v62_v2  ;;  %v173_v5 = vld [vmem:[#allocation7 + $0x70] sm:$0xff]  ;;  %v64_v6 = vld [vmem:[#allocation5] sm:$0xff]  ;;  %v172_v7 = vld [vmem:[#allocation7 + $0x68] sm:$0xff]  ;;  %p422_p2 = scmp.lt.s32.totalorder %s265_s12, %s265_s12 }
  0x28   :  { %307 = vmatprep.subr.mxu0 %v66_v1  ;;  %316 = vmatprep.subr.mxu1 %v174_v4  ;;  %v63_v8 = vld [vmem:[#allocation2 + $0x8] sm:$0xff]  ;;  %v171_v9 = vld [vmem:[#allocation7 + $0x60] sm:$0xff]  ;;  %v169_v11 = vld [vmem:[#allocation7 + $0x50] sm:$0xff] }
  0x29   :  { %308 = vmatpush3.msra.mxu0 %v66_v1  ;;  %317 = vmatpush3.msra.mxu1 %v174_v4  ;;  %v170_v10 = vld [vmem:[#allocation7 + $0x58] sm:$0xff]  ;;  %v168_v12 = vld [vmem:[#allocation7 + $0x48] sm:$0xff]  ;;  %v167_v13 = vld [vmem:[#allocation7 + $0x40] sm:$0xff] }
  0x2a   :  { %309 = vmatprep.subr.mxu0 %v65_v3  ;;  %318 = vmatprep.subr.mxu1 %v173_v5  ;;  %v166_v14 = vld [vmem:[#allocation7 + $0x38] sm:$0xff]  ;;  %v165_v15 = vld [vmem:[#allocation7 + $0x30] sm:$0xff]  ;;  %v164_v16 = vld [vmem:[#allocation7 + $0x28] sm:$0xff] }
  0x2b   :  { %310 = vmatpush3.msra.mxu0 %v65_v3  ;;  %319 = vmatpush3.msra.mxu1 %v173_v5  ;;  %v163_v17 = vld [vmem:[#allocation7 + $0x20] sm:$0xff]  ;;  %v162_v18 = vld [vmem:[#allocation7 + $0x18] sm:$0xff]  ;;  %v161_v19 = vld [vmem:[#allocation7 + $0x10] sm:$0xff] }
  0x2c   :  { %311 = vmatprep.subr.mxu0 %v64_v6  ;;  %320 = vmatprep.subr.mxu1 %v172_v7  ;;  %v160_v20 = vld [vmem:[#allocation7 + $0x8] sm:$0xff]  ;;  %v159_v21 = vld [vmem:[#allocation7] sm:$0xff]  ;;  %v277_v22 = vld [vmem:[%s513_s2] ss:$0 sm:$0xff]  ;;  %s417_s2 = scalar_lea.vmem %s265_s12, 256 }
  0x2d   :  { %312 = vmatpush3.msra.mxu0 %v64_v6  ;;  %321 = vmatpush3.msra.mxu1 %v172_v7  ;;  %v280_v29 = vld [vmem:[%s515_s4] ss:$0 sm:$0xff]  ;;  %p418_p1 = scmp.ne.s32.totalorder %s265_s12, %s417_s2  ;;  %p423_p3 = scmp.lt.s32.totalorder %s417_s2, %s417_s2 }
  0x2e   :  { %314 = vmatmul.mubr.msk.f32.vlgmr.msra.gmra.mxu0 %vm75_vm0, %v63_v8  ;;  %322 = vmatprep.subr.mxu1 %v171_v9 }
  0x2f   :  { %323 = vmatpush3.msra.mxu1 %v171_v9  ;;  %p424_p4 = por %p423_p3, %p422_p2 }
  0x30   :  { %324 = vmatprep.subr.mxu1 %v170_v10 }
  0x31   :  { %325 = vmatpush3.msra.mxu1 %v170_v10  ;;  %p425_p5 = pnand %p424_p4, %p418_p1 }
  0x32   :  { %326 = vmatprep.subr.mxu1 %v169_v11 }
  0x33   :  { %327 = vmatpush3.msra.mxu1 %v169_v11 }
  0x34   :  { %328 = vmatprep.subr.mxu1 %v168_v12 }
  0x35   :  { %329 = vmatpush3.msra.mxu1 %v168_v12 }
  0x36   :  { %330 = vmatprep.subr.mxu1 %v167_v13 }
  0x37   :  { %331 = vmatpush3.msra.mxu1 %v167_v13 }
  0x38   :  { %332 = vmatprep.subr.mxu1 %v166_v14 }
  0x39   :  { %333 = vmatpush3.msra.mxu1 %v166_v14 }
  0x3a   :  { %334 = vmatprep.subr.mxu1 %v165_v15 }
  0x3b   :  { %335 = vmatpush3.msra.mxu1 %v165_v15 }
  0x3c   :  { %336 = vmatprep.subr.mxu1 %v164_v16 }
  0x3d   :  { %337 = vmatpush3.msra.mxu1 %v164_v16 }
  0x3e   :  { %338 = vmatprep.subr.mxu1 %v163_v17 }
  0x3f   :  { %339 = vmatpush3.msra.mxu1 %v163_v17 }
  0x40   :  { %340 = vmatprep.subr.mxu1 %v162_v18 }
  0x41   :  { %341 = vmatpush3.msra.mxu1 %v162_v18 }
  0x42   :  { %342 = vmatprep.subr.mxu1 %v161_v19 }
  0x43   :  { %343 = vmatpush3.msra.mxu1 %v161_v19 }
  0x44   :  { %344 = vmatprep.subr.mxu1 %v160_v20 }
  0x45   :  { %345 = vmatpush3.msra.mxu1 %v160_v20 }
  0x46   :  { %346 = vmatprep.subr.mxu1 %v159_v21 }
  0x47   :  { %347 = vmatpush3.msra.mxu1 %v159_v21 }
  0xee   :  { %v315_v23 = vpop.f32.mrf.mxu0 }
  0xef   :  { %v154_v24 = vadd.f32 %v315_v23, %v277_v22 }
  0xf0   :  { %v148_v25 = vpop.f32.mrf.mxu0 }
  0xf1   :  { %v149_v26 = vadd.f32 %v277_v22, %v148_v25  ;;  %v158_v28 = vmax.f32 %v154_v24, 0.0 }
  0xf3   :  { %v157_v27 = vmax.f32 %v149_v26, 0.0 }
  0xf5   :  { %348 = vmatprep.mubr.f32.mxu1 %v157_v27 }
  0xf6   :  { %349 = vmatmul.mubr.f32.vlgmr.msra.gmra.mxu1 %v158_v28 }
 0x1b6   :  { %v350_v30 = vpop.f32.mrf.mxu1 }
 0x1b7   :  { %v254_v31 = vadd.f32 %v350_v30, %v280_v29 }
 0x1b8   :  { %v248_v32 = vpop.f32.mrf.mxu1 }
 0x1b9   :  { %258 = vst [vmem:[#allocation8 + $0x8] sm:$0xff] %v254_v31  ;;  %v249_v33 = vadd.f32 %v280_v29, %v248_v32 }
 0x1bb   :  { %257 = vst [vmem:[#allocation8] sm:$0xff] %v249_v33 }
 0x1bc   :  { %428 = shalt.err (!%p425_p5)
}
 0x1bd   :  { %270 = dma.vmem_to_hbm [thread:$0]  %s265_s12, 256, %s516_s5, [#allocation4], %s445_s23, %s445_s23, %s446_s24  }
 0x1be   :  { %441 = dma.done.wait [#allocation4], 256  }
 0x1bf   :  { %442 = vsyncadd [#allocation4], 4294967040 }
 0x1c0   :  { %274 = vsyncpa [#allocation3], 1 }
 0x1c1   :  { %275 = vsyncpa [#allocation6], 1 }
 0x1c2   :  { %276 = vsyncpa [#allocation4], 1 }

// kernel: tpu_custom_call.1
= control target key start
LH: loop header
LB: loop body
LE: loop exit
PB: predicated region body
PF: predicated region fallthrough
CT: control target
= control target key end

     0   :  { %10 = vsyncpa [#allocation3], 0  ;;  %s511_s0 = inlined_call_operand.hbm [shape: f32[16,32], index: 0, kind: input, shape index: {}]   ;;  %s512_s1 = inlined_call_operand.hbm [shape: f32[32,128], index: 1, kind: input, shape index: {}]   ;;  %s513_s2 = inlined_call_operand.vmem [shape: f32[1,128], index: 2, kind: input, shape index: {}]   ;;  %s514_s3 = inlined_call_operand.hbm [shape: f32[128,128], index: 3, kind: input, shape index: {}]   ;;  %s515_s4 = inlined_call_operand.vmem [shape: f32[1,128], index: 4, kind: input, shape index: {}]   ;;  %s516_s5 = inlined_call_operand.hbm [shape: f32[16,128], index: 5, kind: output, shape index: {}]  }
   0x1   :  { %11 = vsyncpa [#allocation6], 0 }
   0x2   :  { %12 = vsyncpa [#allocation4], 0  ;;  %s443_s18 = smov [#allocation5]   ;;  %s444_s20 = smov [#allocation2]  }
   0x3   :  { %s30_s19 = sshll.u32 %s443_s18, 4  ;;  %s18_s21 = sshll.u32 %s444_s20, 4  ;;  %s31_s19 = int_to_ptr.vmem [resolvable:$true] %s30_s19  ;;  %s19_s21 = int_to_ptr.vmem [resolvable:$true] %s18_s21 }
   0x4   :  { %s365_s22 = scalar_lea.vmem %s31_s19, 512  ;;  %p370_p1 = scmp.lt.s32.totalorder %s31_s19, %s31_s19 }
   0x5   :  { %p366_p0 = scmp.ne.s32.totalorder %s31_s19, %s365_s22  ;;  %p371_p2 = scmp.lt.s32.totalorder %s365_s22, %s365_s22 }
   0x7   :  { %p372_p3 = por %p371_p2, %p370_p1 }
   0x9   :  { %p373_p4 = pnand %p372_p3, %p366_p0 }
   0xb   :  { %376 = shalt.err (!%p373_p4)
}
   0xc   :  { %s445_s23 = smov 128   ;;  %s446_s24 = smov 8  }
   0xd   :  { %36 = dma.hbm_to_vmem [thread:$0]  %s512_s1, 512, %s31_s19, [#allocation6], %s445_s23, %s445_s23, %s446_s24  }
   0xe   :  { %s385_s27 = scalar_lea.vmem %s19_s21, 256  ;;  %p390_p6 = scmp.lt.s32.totalorder %s19_s21, %s19_s21 }
   0xf   :  { %p386_p5 = scmp.ne.s32.totalorder %s19_s21, %s385_s27  ;;  %p391_p7 = scmp.lt.s32.totalorder %s385_s27, %s385_s27 }
  0x11   :  { %p392_p8 = por %p391_p7, %p390_p6 }
  0x13   :  { %p393_p9 = pnand %p392_p8, %p386_p5 }
  0x15   :  { %396 = shalt.err (!%p393_p9)
}
  0x16   :  { %24 = dma.hbm_to_vmem [thread:$0]  %s511_s0, 256, %s19_s21, [#allocation3], %s445_s23, %s445_s23, %s446_s24  }
  0x17   :  { %s447_s30 = smov [#allocation7]  }
  0x18   :  { %s44_s6 = sshll.u32 %s447_s30, 4  ;;  %s45_s6 = int_to_ptr.vmem [resolvable:$true] %s44_s6 }
  0x19   :  { %s405_s7 = scalar_lea.vmem %s45_s6, 2048  ;;  %p410_p11 = scmp.lt.s32.totalorder %s45_s6, %s45_s6 }
  0x1a   :  { %p406_p10 = scmp.ne.s32.totalorder %s45_s6, %s405_s7  ;;  %p411_p12 = scmp.lt.s32.totalorder %s405_s7, %s405_s7 }
  0x1c   :  { %p412_p13 = por %p411_p12, %p410_p11 }
  0x1e   :  { %p413_p0 = pnand %p412_p13, %p406_p10 }
  0x20   :  { %416 = shalt.err (!%p413_p0)
}
  0x21   :  { %50 = dma.hbm_to_vmem [thread:$0]  %s514_s3, 2048, %s45_s6, [#allocation6], %s445_s23, %s445_s23, %s446_s24  }
  0x22   :  { %437 = dma.done.wait [#allocation3], 256  }
  0x23   :  { %438 = vsyncadd [#allocation3], 4294967040 }
  0x24   :  { %439 = dma.done.wait [#allocation6], 2560  }
  0x25   :  { %440 = vsyncadd [#allocation6], 4294964736  ;;  %vm75_vm0 = vcmask 261120   ;;  %v67_v0 = vld [vmem:[#allocation5 + $0x18] sm:$0xff]  ;;  %v66_v1 = vld [vmem:[#allocation5 + $0x10] sm:$0xff]  ;;  %s448_s11 = smov [#allocation8]  }
  0x26   :  { %305 = vmatprep.subr.mxu0 %v67_v0  ;;  %v62_v2 = vld [vmem:[#allocation2] sm:$0xff]  ;;  %v65_v3 = vld [vmem:[#allocation5 + $0x8] sm:$0xff]  ;;  %v174_v4 = vld [vmem:[#allocation7 + $0x78] sm:$0xff]  ;;  %s264_s12 = sshll.u32 %s448_s11, 4  ;;  %s265_s12 = int_to_ptr.vmem [resolvable:$true] %s264_s12 }
  0x27   :  { %306 = vmatpush3.msra.mxu0 %v67_v0  ;;  %313 = vmatprep.mubr.msk.f32.mxu0 %vm75_vm0, %v62_v2  ;;  %v173_v5 = vld [vmem:[#allocation7 + $0x70] sm:$0xff]  ;;  %v64_v6 = vld [vmem:[#allocation5] sm:$0xff]  ;;  %v172_v7 = vld [vmem:[#allocation7 + $0x68] sm:$0xff]  ;;  %p422_p2 = scmp.lt.s32.totalorder %s265_s12, %s265_s12 }
  0x28   :  { %307 = vmatprep.subr.mxu0 %v66_v1  ;;  %316 = vmatprep.subr.mxu1 %v174_v4  ;;  %v63_v8 = vld [vmem:[#allocation2 + $0x8] sm:$0xff]  ;;  %v171_v9 = vld [vmem:[#allocation7 + $0x60] sm:$0xff]  ;;  %v169_v11 = vld [vmem:[#allocation7 + $0x50] sm:$0xff] }
  0x29   :  { %308 = vmatpush3.msra.mxu0 %v66_v1  ;;  %317 = vmatpush3.msra.mxu1 %v174_v4  ;;  %v170_v10 = vld [vmem:[#allocation7 + $0x58] sm:$0xff]  ;;  %v168_v12 = vld [vmem:[#allocation7 + $0x48] sm:$0xff]  ;;  %v167_v13 = vld [vmem:[#allocation7 + $0x40] sm:$0xff] }
  0x2a   :  { %309 = vmatprep.subr.mxu0 %v65_v3  ;;  %318 = vmatprep.subr.mxu1 %v173_v5  ;;  %v166_v14 = vld [vmem:[#allocation7 + $0x38] sm:$0xff]  ;;  %v165_v15 = vld [vmem:[#allocation7 + $0x30] sm:$0xff]  ;;  %v164_v16 = vld [vmem:[#allocation7 + $0x28] sm:$0xff] }
  0x2b   :  { %310 = vmatpush3.msra.mxu0 %v65_v3  ;;  %319 = vmatpush3.msra.mxu1 %v173_v5  ;;  %v163_v17 = vld [vmem:[#allocation7 + $0x20] sm:$0xff]  ;;  %v162_v18 = vld [vmem:[#allocation7 + $0x18] sm:$0xff]  ;;  %v161_v19 = vld [vmem:[#allocation7 + $0x10] sm:$0xff] }
  0x2c   :  { %311 = vmatprep.subr.mxu0 %v64_v6  ;;  %320 = vmatprep.subr.mxu1 %v172_v7  ;;  %v160_v20 = vld [vmem:[#allocation7 + $0x8] sm:$0xff]  ;;  %v159_v21 = vld [vmem:[#allocation7] sm:$0xff]  ;;  %v277_v22 = vld [vmem:[%s513_s2] ss:$0 sm:$0xff]  ;;  %s417_s2 = scalar_lea.vmem %s265_s12, 256 }
  0x2d   :  { %312 = vmatpush3.msra.mxu0 %v64_v6  ;;  %321 = vmatpush3.msra.mxu1 %v172_v7  ;;  %v280_v29 = vld [vmem:[%s515_s4] ss:$0 sm:$0xff]  ;;  %p418_p1 = scmp.ne.s32.totalorder %s265_s12, %s417_s2  ;;  %p423_p3 = scmp.lt.s32.totalorder %s417_s2, %s417_s2 }
  0x2e   :  { %314 = vmatmul.mubr.msk.f32.vlgmr.msra.gmra.mxu0 %vm75_vm0, %v63_v8  ;;  %322 = vmatprep.subr.mxu1 %v171_v9 }
  0x2f   :  { %323 = vmatpush3.msra.mxu1 %v171_v9  ;;  %p424_p4 = por %p423_p3, %p422_p2 }
  0x30   :  { %324 = vmatprep.subr.mxu1 %v170_v10 }
  0x31   :  { %325 = vmatpush3.msra.mxu1 %v170_v10  ;;  %p425_p5 = pnand %p424_p4, %p418_p1 }
  0x32   :  { %326 = vmatprep.subr.mxu1 %v169_v11 }
  0x33   :  { %327 = vmatpush3.msra.mxu1 %v169_v11 }
  0x34   :  { %328 = vmatprep.subr.mxu1 %v168_v12 }
  0x35   :  { %329 = vmatpush3.msra.mxu1 %v168_v12 }
  0x36   :  { %330 = vmatprep.subr.mxu1 %v167_v13 }
  0x37   :  { %331 = vmatpush3.msra.mxu1 %v167_v13 }
  0x38   :  { %332 = vmatprep.subr.mxu1 %v166_v14 }
  0x39   :  { %333 = vmatpush3.msra.mxu1 %v166_v14 }
  0x3a   :  { %334 = vmatprep.subr.mxu1 %v165_v15 }
  0x3b   :  { %335 = vmatpush3.msra.mxu1 %v165_v15 }
  0x3c   :  { %336 = vmatprep.subr.mxu1 %v164_v16 }
  0x3d   :  { %337 = vmatpush3.msra.mxu1 %v164_v16 }
  0x3e   :  { %338 = vmatprep.subr.mxu1 %v163_v17 }
  0x3f   :  { %339 = vmatpush3.msra.mxu1 %v163_v17 }
  0x40   :  { %340 = vmatprep.subr.mxu1 %v162_v18 }
  0x41   :  { %341 = vmatpush3.msra.mxu1 %v162_v18 }
  0x42   :  { %342 = vmatprep.subr.mxu1 %v161_v19 }
  0x43   :  { %343 = vmatpush3.msra.mxu1 %v161_v19 }
  0x44   :  { %344 = vmatprep.subr.mxu1 %v160_v20 }
  0x45   :  { %345 = vmatpush3.msra.mxu1 %v160_v20 }
  0x46   :  { %346 = vmatprep.subr.mxu1 %v159_v21 }
  0x47   :  { %347 = vmatpush3.msra.mxu1 %v159_v21 }
  0xee   :  { %v315_v23 = vpop.f32.mrf.mxu0 }
  0xef   :  { %v154_v24 = vadd.f32 %v315_v23, %v277_v22 }
  0xf0   :  { %v148_v25 = vpop.f32.mrf.mxu0 }
  0xf1   :  { %v149_v26 = vadd.f32 %v277_v22, %v148_v25  ;;  %v158_v28 = vmax.f32 %v154_v24, 0.0 }
  0xf3   :  { %v157_v27 = vmax.f32 %v149_v26, 0.0 }
  0xf5   :  { %348 = vmatprep.mubr.f32.mxu1 %v157_v27 }
  0xf6   :  { %349 = vmatmul.mubr.f32.vlgmr.msra.gmra.mxu1 %v158_v28 }
 0x1b6   :  { %v350_v30 = vpop.f32.mrf.mxu1 }
 0x1b7   :  { %v254_v31 = vadd.f32 %v350_v30, %v280_v29 }
 0x1b8   :  { %v248_v32 = vpop.f32.mrf.mxu1 }
 0x1b9   :  { %258 = vst [vmem:[#allocation8 + $0x8] sm:$0xff] %v254_v31  ;;  %v249_v33 = vadd.f32 %v280_v29, %v248_v32 }
 0x1bb   :  { %257 = vst [vmem:[#allocation8] sm:$0xff] %v249_v33 }
 0x1bc   :  { %428 = shalt.err (!%p425_p5)
}
 0x1bd   :  { %270 = dma.vmem_to_hbm [thread:$0]  %s265_s12, 256, %s516_s5, [#allocation4], %s445_s23, %s445_s23, %s446_s24  }
 0x1be   :  { %441 = dma.done.wait [#allocation4], 256  }
 0x1bf   :  { %442 = vsyncadd [#allocation4], 4294967040 }
 0x1c0   :  { %274 = vsyncpa [#allocation3], 1 }
 0x1c1   :  { %275 = vsyncpa [#allocation6], 1 }
 0x1c2   :  { %276 = vsyncpa [#allocation4], 1 }

</bundles_post_ra>
